<compile_context>
chip_gen: v5e
topology: v5e:2x2
jax: 0.10.0
libtpu: 0.0.40
codegen_flags: <defaults>
</compile_context>

<pallas_src>
import functools

import jax
import jax.numpy as jnp
from jax.experimental import pallas as pl
from jax.experimental.pallas import tpu as pltpu


def _cdiv(a, b):
    return -(-a // b)


def _round_up(n, m):
    return ((n + m - 1) // m) * m


def _num_tensorcores():
    """2 for v7x megacore (a 'parallel' grid axis shards across 2 TCs), else 1."""
    try:
        kind = jax.devices()[0].device_kind.lower()
    except Exception:
        return 1
    return 2 if ("v7" in kind or "7x" in kind) else 1


def _plan_batch_tiling(batch, tm_max, n_cores):
    """Pick (tm, n_steps) so each step moves a big tile, padding waste stays
    <8 rows per step, and (on v7x) the step count is even for megacore balance."""
    n_steps = _cdiv(batch, tm_max)
    if n_cores > 1:
        # Keep both TensorCores busy with a balanced (even) step count.
        n_steps = _round_up(max(n_steps, n_cores), n_cores)
    # Never create steps with no real rows (keeps the last block non-empty).
    n_steps = max(1, min(n_steps, _cdiv(batch, 8)))
    tm = _round_up(_cdiv(batch, n_steps), 8)
    n_steps = _cdiv(batch, tm)          # final grid; last tile may be ragged
    return tm, n_steps


def ae_folded_kernel(x_ref, w_ref, b_ref, o_ref):
    # (tm, D) @ (D, D) on the MXU with f32 accumulation, + (1, D) bias.
    x = x_ref[...]
    w = w_ref[...]
    if x.dtype != w.dtype:
        x = x.astype(w.dtype)           # per-tile cast in VMEM; no extra HBM pass
    y = jnp.dot(x, w, preferred_element_type=jnp.float32)
    o_ref[...] = (y + b_ref[...]).astype(o_ref.dtype)


def fold_ae_params(w_enc, b_enc, w_dec, b_dec, compute_dtype=jnp.float32):
    """Fold encoder+decoder into one (D, D) weight and (1, D) bias.

    Call ONCE after init / per weight update, never inside the forward path.
    The fold itself is always done in f32; only the final weight is cast to
    compute_dtype (use jnp.bfloat16 to halve the dominant HBM reads). The bias
    stays f32 because it is added to the f32 accumulator.
    """
    w_enc = w_enc.astype(jnp.float32)
    w_dec = w_dec.astype(jnp.float32)
    b_enc = b_enc.astype(jnp.float32)
    b_dec = b_dec.astype(jnp.float32)
    w = (w_enc.T @ w_dec.T).astype(compute_dtype)        # (D, D)
    b = (b_enc @ w_dec.T + b_dec).astype(jnp.float32)    # (D,)
    return w, b.reshape(1, -1)


@functools.partial(
    jax.jit, static_argnames=("tm_max", "min_pallas_rows", "out_dtype"))
def simple_ae_forward(x, w_folded, b_folded, *, tm_max=None,
                      min_pallas_rows=1024, out_dtype=jnp.float32):
    """x: (B, D).  (w_folded, b_folded) from fold_ae_params.  Returns (B, D)."""
    B, D = x.shape

    # Tiny batches: a standalone Pallas launch is pure overhead; let XLA fuse.
    if B < min_pallas_rows:
        y = x.astype(w_folded.dtype) @ w_folded + b_folded
        return y.astype(out_dtype)

    if tm_max is None:
        tm_max = 4096 if w_folded.dtype == jnp.bfloat16 else 2048

    n_cores = _num_tensorcores()
    tm, n_steps = _plan_batch_tiling(B, tm_max, n_cores)

    x_bytes = jnp.dtype(x.dtype).itemsize
    w_bytes = jnp.dtype(w_folded.dtype).itemsize
    o_bytes = jnp.dtype(out_dtype).itemsize
    need = (2 * tm * D * x_bytes          # double-buffered x tiles
            + 2 * tm * D * o_bytes        # double-buffered out tiles
            + 2 * D * D * w_bytes         # folded W (grid-invariant, still 2-buffered)
            + 2 * D * 4)                  # bias
    vmem_limit = int(min(max(2 * need, 4 << 20), 32 << 20))

    out = pl.pallas_call(
        ae_folded_kernel,
        out_shape=jax.ShapeDtypeStruct((B, D), out_dtype),
        grid_spec=pltpu.PrefetchScalarGridSpec(
            num_scalar_prefetch=0,
            grid=(n_steps,),
            in_specs=[
                pl.BlockSpec((tm, D), lambda i: (i, 0)),   # batch-streamed x tile
                pl.BlockSpec((D, D), lambda i: (0, 0)),    # folded W (grid-invariant)
                pl.BlockSpec((1, D), lambda i: (0, 0)),    # folded bias
            ],
            out_specs=pl.BlockSpec((tm, D), lambda i: (i, 0)),
        ),
        # Single batch axis is data-parallel -> megacore sharding on v7x.
        compiler_params=pltpu.CompilerParams(
            dimension_semantics=("parallel",),
            vmem_limit_bytes=vmem_limit),
    )(x, w_folded, b_folded)
    return out


def _init_linear(key, out_f, in_f, dtype=jnp.float32):
    # PyTorch nn.Linear default init: U(-1/sqrt(in_f), 1/sqrt(in_f))
    kw, kb = jax.random.split(key)
    bound = 1.0 / (in_f ** 0.5)
    w = jax.random.uniform(kw, (out_f, in_f), dtype, minval=-bound, maxval=bound)
    b = jax.random.uniform(kb, (out_f,), dtype, minval=-bound, maxval=bound)
    return w, b


if __name__ == "__main__":
    key = jax.random.PRNGKey(0)
    k_x1, k_x2, k_enc, k_dec = jax.random.split(key, 4)

    D = 128               # input_shape
    H = D // 2            # input_shape // 2

    w_enc, b_enc = _init_linear(k_enc, H, D)
    w_dec, b_dec = _init_linear(k_dec, D, H)

    # Fold / transpose ONCE, outside the per-call hot path (f32 to match torch).
    w_f, b_f = fold_ae_params(w_enc, b_enc, w_dec, b_dec)

    def ref_fwd(x):
        # Pure-JAX reference matching the PyTorch forward exactly (two Linears).
        return (x @ w_enc.T + b_enc) @ w_dec.T + b_dec

    # 1) Small batch, Pallas path forced (default dispatch would use the XLA
    #    fallback for B this small).
    x_small = jax.random.normal(k_x1, (8, D), jnp.float32)
    out_small = jax.block_until_ready(
        simple_ae_forward(x_small, w_f, b_f, min_pallas_rows=0))
    assert out_small.shape == (8, D)
    assert jnp.allclose(out_small, ref_fwd(x_small), atol=1e-4, rtol=1e-4), \
        "small-batch mismatch vs reference"

    # 2) Batch not a multiple of 8: exercises the ragged last tile (no padding
    #    pass, OOB rows of the final block are dropped by Pallas).
    x_big = jax.random.normal(k_x2, (300, D), jnp.float32)
    out_big = jax.block_until_ready(
        simple_ae_forward(x_big, w_f, b_f, min_pallas_rows=0))
    assert out_big.shape == (300, D)
    assert jnp.allclose(out_big, ref_fwd(x_big), atol=1e-4, rtol=1e-4), \
        "ragged-batch mismatch vs reference"

    # 3) Default dispatch (small batch -> fused XLA fallback) still matches.
    out_fb = jax.block_until_ready(simple_ae_forward(x_small, w_f, b_f))
    assert jnp.allclose(out_fb, ref_fwd(x_small), atol=1e-4, rtol=1e-4), \
        "fallback mismatch vs reference"

    print("KERNEL_OK")
</pallas_src>

<mosaic_0001>
module attributes {stable_mosaic.version = 11 : i64} {
  func.func @ae_folded_kernel(%arg0: i32, %arg1: memref<8x128xf32, #tpu.memory_space<vmem>>, %arg2: memref<128x128xf32, #tpu.memory_space<vmem>>, %arg3: memref<1x128xf32, #tpu.memory_space<vmem>>, %arg4: memref<8x128xf32, #tpu.memory_space<vmem>>) attributes {dimension_semantics = [#tpu.dimension_semantics<parallel>], iteration_bounds = array<i64: 1>, scalar_prefetch = 0 : i64, scratch_operands = 0 : i64, tpu.core_type = #tpu.core_type<tc>, window_params = [{transform_indices = @transform_0, window_bounds = array<i64: 8, 128>}, {pipeline_mode = #tpu.pipeline_mode<synchronous>, transform_indices = @transform_1, window_bounds = array<i64: 128, 128>}, {pipeline_mode = #tpu.pipeline_mode<synchronous>, transform_indices = @transform_2, window_bounds = array<i64: 1, 128>}, {transform_indices = @transform_3, window_bounds = array<i64: 8, 128>}]} {
    %c0 = arith.constant 0 : index
    %c0_0 = arith.constant 0 : index
    %0 = vector.load %arg1[%c0, %c0_0] : memref<8x128xf32, #tpu.memory_space<vmem>>, vector<8x128xf32>
    %c0_1 = arith.constant 0 : index
    %c0_2 = arith.constant 0 : index
    %1 = vector.load %arg2[%c0_1, %c0_2] : memref<128x128xf32, #tpu.memory_space<vmem>>, vector<128x128xf32>
    %cst = arith.constant dense<0.000000e+00> : vector<8x128xf32>
    %2 = tpu.matmul %0, %1, %cst {dimension_numbers = #tpu.dot_dimension_numbers<[1], [0], [0], [1], [0, 0, 1, 1], [], []>} : vector<8x128xf32>, vector<128x128xf32>, vector<8x128xf32> -> vector<8x128xf32>
    %c0_3 = arith.constant 0 : index
    %c0_4 = arith.constant 0 : index
    %3 = vector.load %arg3[%c0_3, %c0_4] : memref<1x128xf32, #tpu.memory_space<vmem>>, vector<1x128xf32>
    %4 = vector.broadcast %3 : vector<1x128xf32> to vector<8x128xf32>
    %5 = arith.addf %2, %4 : vector<8x128xf32>
    %c0_5 = arith.constant 0 : index
    %c0_6 = arith.constant 0 : index
    %6 = vector.load %arg4[%c0_5, %c0_6] : memref<8x128xf32, #tpu.memory_space<vmem>>, vector<8x128xf32>
    tpu.vector_store %arg4[%c0_5, %c0_6], %5 {strides = array<i32>} : memref<8x128xf32, #tpu.memory_space<vmem>>, vector<8x128xf32>,
    return
  }
  func.func @transform_0(%arg0: i32) -> (i32, i32) {
    %c0_i32 = arith.constant 0 : i32
    %c0_i32_0 = arith.constant 0 : i32
    return %arg0, %c0_i32 : i32, i32
  }
  func.func @transform_1(%arg0: i32) -> (i32, i32) {
    %c0_i32 = arith.constant 0 : i32
    %c0_i32_0 = arith.constant 0 : i32
    %c0_i32_1 = arith.constant 0 : i32
    return %c0_i32, %c0_i32_0 : i32, i32
  }
  func.func @transform_2(%arg0: i32) -> (i32, i32) {
    %c0_i32 = arith.constant 0 : i32
    %c0_i32_0 = arith.constant 0 : i32
    %c0_i32_1 = arith.constant 0 : i32
    return %c0_i32, %c0_i32_0 : i32, i32
  }
  func.func @transform_3(%arg0: i32) -> (i32, i32) {
    %c0_i32 = arith.constant 0 : i32
    %c0_i32_0 = arith.constant 0 : i32
    return %arg0, %c0_i32 : i32, i32
  }
}

</mosaic_0001>

<bundles_post_ra>
// kernel: simple_ae_forward.1
= control target key start
LH: loop header
LB: loop body
LE: loop exit
PB: predicated region body
PF: predicated region fallthrough
CT: control target
= control target key end

     0   :  { %8 = vsyncpa [#allocation3], 0  ;;  %s226_s0 = inlined_call_operand.hbm [shape: f32[8,128], index: 0, kind: input, shape index: {}]   ;;  %s227_s1 = inlined_call_operand.hbm [shape: f32[128,128], index: 1, kind: input, shape index: {}]   ;;  %s228_s2 = inlined_call_operand.vmem [shape: f32[1,128], index: 2, kind: input, shape index: {}]   ;;  %s229_s3 = inlined_call_operand.hbm [shape: f32[8,128], index: 3, kind: output, shape index: {}]  }
   0x1   :  { %9 = vsyncpa [#allocation6], 0 }
   0x2   :  { %10 = vsyncpa [#allocation4], 0  ;;  %s16_s14 = sshll.u32 %s226_s0, 4  ;;  %s189_s15 = smov [#allocation2]   ;;  %s17_s14 = int_to_ptr.hbm [resolvable:$true] %s16_s14 }
   0x3   :  { %s18_s16 = sshll.u32 %s189_s15, 4  ;;  %s26_s19 = sshll.u32 %s227_s1, 4  ;;  %s19_s16 = int_to_ptr.vmem [resolvable:$true] %s18_s16  ;;  %s27_s19 = int_to_ptr.hbm [resolvable:$true] %s26_s19 }
   0x4   :  { %21 = dma.hbm_to_vmem [thread:$0]  %s17_s14, 128, %s19_s16, [#allocation3]  }
   0x5   :  { %s190_s20 = smov [#allocation5]   ;;  %s191_s22 = smov 128  }
   0x6   :  { %s28_s21 = sshll.u32 %s190_s20, 4  ;;  %s192_s23 = smov 8   ;;  %s29_s21 = int_to_ptr.vmem [resolvable:$true] %s28_s21 }
   0x7   :  { %34 = dma.hbm_to_vmem [thread:$0]  %s27_s19, 2048, %s29_s21, [#allocation6], %s191_s22, %s191_s22, %s192_s23  }
   0x8   :  { %183 = dma.done.wait [#allocation3], 128  }
   0x9   :  { %184 = vsyncadd [#allocation3], 4294967168 }
   0xa   :  { %185 = dma.done.wait [#allocation6], 2048  }
   0xb   :  { %186 = vsyncadd [#allocation6], 4294965248  ;;  %v61_v0 = vld [vmem:[#allocation5 + $0x78] sm:$0xff]  ;;  %v60_v1 = vld [vmem:[#allocation5 + $0x70] sm:$0xff]  ;;  %s193_s24 = smov [#allocation7]   ;;  %s94_s28 = sshll.u32 %s229_s3, 4  ;;  %s95_s28 = int_to_ptr.hbm [resolvable:$true] %s94_s28 }
   0xc   :  { %66 = vmatpush.msra.mxu0 %v61_v0  ;;  %v59_v2 = vld [vmem:[#allocation5 + $0x68] sm:$0xff]  ;;  %v58_v3 = vld [vmem:[#allocation5 + $0x60] sm:$0xff]  ;;  %v57_v4 = vld [vmem:[#allocation5 + $0x58] sm:$0xff]  ;;  %s92_s25 = sshll.u32 %s193_s24, 4  ;;  %s93_s25 = int_to_ptr.vmem [resolvable:$true] %s92_s25 }
   0xd   :  { %v56_v5 = vld [vmem:[#allocation5 + $0x50] sm:$0xff]  ;;  %v55_v6 = vld [vmem:[#allocation5 + $0x48] sm:$0xff]  ;;  %v54_v7 = vld [vmem:[#allocation5 + $0x40] sm:$0xff] }
   0xe   :  { %67 = vmatpush.msra.mxu0 %v60_v1  ;;  %v53_v8 = vld [vmem:[#allocation5 + $0x38] sm:$0xff]  ;;  %v52_v9 = vld [vmem:[#allocation5 + $0x30] sm:$0xff]  ;;  %v51_v10 = vld [vmem:[#allocation5 + $0x28] sm:$0xff] }
   0xf   :  { %v50_v11 = vld [vmem:[#allocation5 + $0x20] sm:$0xff]  ;;  %v49_v12 = vld [vmem:[#allocation5 + $0x18] sm:$0xff]  ;;  %v48_v13 = vld [vmem:[#allocation5 + $0x10] sm:$0xff] }
  0x10   :  { %68 = vmatpush.msra.mxu0 %v59_v2  ;;  %v47_v14 = vld [vmem:[#allocation5 + $0x8] sm:$0xff]  ;;  %v46_v15 = vld [vmem:[#allocation5] sm:$0xff]  ;;  %v45_v16 = vld [vmem:[#allocation2] sm:$0xff] }
  0x11   :  { %v110_v17 = vld [vmem:[%s228_s2] ss:$0 sm:$0xff] }
  0x12   :  { %69 = vmatpush.msra.mxu0 %v58_v3 }
  0x14   :  { %70 = vmatpush.msra.mxu0 %v57_v4 }
  0x16   :  { %71 = vmatpush.msra.mxu0 %v56_v5 }
  0x18   :  { %72 = vmatpush.msra.mxu0 %v55_v6 }
  0x1a   :  { %73 = vmatpush.msra.mxu0 %v54_v7 }
  0x1c   :  { %74 = vmatpush.msra.mxu0 %v53_v8 }
  0x1e   :  { %75 = vmatpush.msra.mxu0 %v52_v9 }
  0x20   :  { %76 = vmatpush.msra.mxu0 %v51_v10 }
  0x22   :  { %77 = vmatpush.msra.mxu0 %v50_v11 }
  0x24   :  { %78 = vmatpush.msra.mxu0 %v49_v12 }
  0x26   :  { %79 = vmatpush.msra.mxu0 %v48_v13 }
  0x28   :  { %80 = vmatpush.msra.mxu0 %v47_v14 }
  0x2a   :  { %81 = vmatpush.msra.mxu0 %v46_v15 }
  0x2b   :  { %82 = vmatmul.f32.vlgmr.msra.gmra.mxu0 %v45_v16 }
  0xa8   :  { %v83_v18 = vpop.f32.mrf.mxu0 }
  0xa9   :  { %v84_v19 = vadd.f32 %v110_v17, %v83_v18 }
  0xab   :  { %86 = vst [vmem:[#allocation7] sm:$0xff] %v84_v19 }
  0xac   :  { %97 = dma.vmem_to_hbm [thread:$0]  %s93_s25, 128, %s95_s28, [#allocation4]  }
  0xad   :  { %187 = dma.done.wait [#allocation4], 128  }
  0xae   :  { %188 = vsyncadd [#allocation4], 4294967168 }
  0xaf   :  { %102 = vsyncpa [#allocation3], 1 }
  0xb0   :  { %103 = vsyncpa [#allocation6], 1 }
  0xb1   :  { %104 = vsyncpa [#allocation4], 1 }

</bundles_post_ra>
